<compile_context>
chip_gen: v7x
topology: tpu7x:2x2x1
jax: 0.10.0
libtpu: 0.0.40
codegen_flags: <defaults>
</compile_context>

<pallas_src>
import functools

import jax
import jax.numpy as jnp
from jax.experimental import pallas as pl
from jax.experimental.pallas import tpu as pltpu


# --------------------------------------------------------------------------
# Pallas kernel: fc1 -> ReLU -> fc2 -> ReLU -> (mean-folded fc3) per row tile.
# --------------------------------------------------------------------------
def _core_extractor_kernel(x_ref, w1_ref, b1_ref, w2_ref, b2_ref,
                           w3m_ref, b3m_ref, score_ref):
    w_dtype = w1_ref.dtype
    x = x_ref[...]                                                # (TM, E)
    h1 = jnp.dot(x, w1_ref[...], preferred_element_type=jnp.float32)
    h1 = jnp.maximum(h1 + b1_ref[...], 0.0)                       # (TM, H) f32
    h2 = jnp.dot(h1.astype(w_dtype), w2_ref[...],
                 preferred_element_type=jnp.float32)
    h2 = jnp.maximum(h2 + b2_ref[...], 0.0)                       # (TM, H) f32
    # fc3 + mean folded into a single (1,H) @ (H,TM) dot -> lane-dense row.
    s = jnp.dot(w3m_ref[...], h2.astype(w_dtype).T,
                preferred_element_type=jnp.float32)               # (1, TM)
    score_ref[...] = s + b3m_ref[...]                             # broadcast (1,1)


def core_extractor_scores(x2d, w1, b1, w2, b2, w3, b3, *,
                          tile_m=256, compute_dtype=jnp.float32):
    """x2d: (M, E) -> per-row score mean(fc3(relu(fc2(relu(fc1(x)))))), shape (M,)."""
    M, E = x2d.shape
    H = w1.shape[1]

    # Fold the mean over the agent axis into fc3 (no nonlinearity after fc3).
    w3m = w3.mean(axis=1).reshape(1, H)                 # (1, H)
    b3m = b3.mean().reshape(1, 1).astype(jnp.float32)   # (1, 1)

    # Tile sizing: multiple of 128, no bigger than needed, pad the tail rows.
    tile_m = max(128, (min(tile_m, pl.cdiv(M, 128) * 128) // 128) * 128)
    grid_m = pl.cdiv(M, tile_m)
    m_pad = grid_m * tile_m
    if m_pad != M:
        x2d = jnp.pad(x2d, ((0, m_pad - M), (0, 0)))

    xc = x2d.astype(compute_dtype)
    w1c = w1.astype(compute_dtype)
    w2c = w2.astype(compute_dtype)
    w3mc = w3m.astype(compute_dtype)
    b1f = b1.astype(jnp.float32)
    b2f = b2.astype(jnp.float32)

    el = jnp.dtype(compute_dtype).itemsize
    cost = pl.CostEstimate(
        flops=2 * m_pad * (E * H + H * H + H),
        transcendentals=0,
        bytes_accessed=(m_pad * E * el            # x
                        + (E * H + H * H + H) * el  # weights
                        + 2 * H * 4 + 4             # biases
                        + m_pad * 4),               # scores out
    )

    full = lambda i: (0, 0)
    scores = pl.pallas_call(
        _core_extractor_kernel,
        out_shape=jax.ShapeDtypeStruct((1, m_pad), jnp.float32),
        grid_spec=pltpu.PrefetchScalarGridSpec(
            num_scalar_prefetch=0,
            grid=(grid_m,),
            in_specs=[
                pl.BlockSpec((tile_m, E), lambda i: (i, 0)),  # x rows
                pl.BlockSpec((E, H), full),                   # w1 (resident)
                pl.BlockSpec((1, H), full),                   # b1
                pl.BlockSpec((H, H), full),                   # w2
                pl.BlockSpec((1, H), full),                   # b2
                pl.BlockSpec((1, H), full),                   # w3 mean row
                pl.BlockSpec((1, 1), full),                   # b3 mean
            ],
            out_specs=pl.BlockSpec((1, tile_m), lambda i: (0, i)),  # lane-dense
        ),
        compiler_params=pltpu.CompilerParams(
            dimension_semantics=("parallel",)),
        cost_estimate=cost,
    )(xc, w1c, b1f, w2c, b2f, w3mc, b3m)

    return scores[0, :M]


# --------------------------------------------------------------------------
# CoreExtractor wrapper ('nn' core_extractor_type)
# --------------------------------------------------------------------------
class CoreExtractorParams:
    """Deterministic parameter init matching nn.Linear shapes (stored (in, out))."""

    def __init__(self, key, input_shape, core_hidden_dim, n_agents):
        k1, k2, k3, k4, k5, k6 = jax.random.split(key, 6)

        def uinit(k, shape, fan_in):
            bound = 1.0 / jnp.sqrt(jnp.float32(fan_in))
            return jax.random.uniform(k, shape, jnp.float32, -bound, bound)

        self.w1 = uinit(k1, (input_shape, core_hidden_dim), input_shape)
        self.b1 = uinit(k2, (1, core_hidden_dim), input_shape)
        self.w2 = uinit(k3, (core_hidden_dim, core_hidden_dim), core_hidden_dim)
        self.b2 = uinit(k4, (1, core_hidden_dim), core_hidden_dim)
        self.w3 = uinit(k5, (core_hidden_dim, n_agents), core_hidden_dim)
        self.b3 = uinit(k6, (1, n_agents), core_hidden_dim)


@functools.partial(jax.jit, static_argnames=("dominators", "compute_dtype"))
def core_extractor_forward_nn(x, w1, b1, w2, b2, w3, b3, *, dominators,
                              compute_dtype=jnp.float32):
    """Equivalent of CoreExtractor._forward_nn ('nn' mode).

    x: (b, a, e) float32
    returns (dominators_idx (b, dominators), followers_idx (b, a - dominators))
    """
    b, a, e = x.shape
    scores = core_extractor_scores(
        x.reshape(b * a, e), w1, b1, w2, b2, w3, b3,
        compute_dtype=compute_dtype).reshape(b, a)
    # TODO(synk): descending sort over the tiny agent axis stays in plain JAX;
    # tie-breaking order may differ from torch.sort(descending=True).
    sorted_idx = jnp.argsort(-scores, axis=-1)
    dominators_idx = sorted_idx[:, :dominators]
    followers_idx = sorted_idx[:, dominators:]
    return dominators_idx, followers_idx


# --------------------------------------------------------------------------
# Demo / smoke test
# --------------------------------------------------------------------------
if __name__ == "__main__":
    # args: n_agents=8, dominator_num=3, core_hidden_dim=32,
    #       core_extractor_type='nn', input_shape (obs dim) = 32
    batch = 2
    n_agents = 8
    dominator_num = 3
    core_hidden_dim = 32
    input_shape = 32

    key = jax.random.PRNGKey(0)
    kx, kp = jax.random.split(key)

    x = jax.random.normal(kx, (batch, n_agents, input_shape), jnp.float32)
    params = CoreExtractorParams(kp, input_shape, core_hidden_dim, n_agents)

    dom_idx, fol_idx = core_extractor_forward_nn(
        x, params.w1, params.b1, params.w2, params.b2, params.w3, params.b3,
        dominators=dominator_num)
    jax.block_until_ready((dom_idx, fol_idx))

    # sanity: shapes and the two index sets partition [0, n_agents)
    assert dom_idx.shape == (batch, dominator_num)
    assert fol_idx.shape == (batch, n_agents - dominator_num)
    all_idx = jnp.sort(jnp.concatenate([dom_idx, fol_idx], axis=1), axis=1)
    assert jnp.array_equal(
        all_idx, jnp.broadcast_to(jnp.arange(n_agents), (batch, n_agents)))

    # cross-check kernel MLP+mean against pure-JAX reference (f32 path)
    def ref_scores(x2d):
        h1 = jnp.maximum(x2d @ params.w1 + params.b1, 0.0)
        h2 = jnp.maximum(h1 @ params.w2 + params.b2, 0.0)
        out = h2 @ params.w3 + params.b3
        return out.mean(axis=-1)

    x2d = x.reshape(batch * n_agents, input_shape)
    ref = ref_scores(x2d)
    got_f32 = core_extractor_scores(
        x2d, params.w1, params.b1, params.w2, params.b2, params.w3, params.b3,
        compute_dtype=jnp.float32)
    jax.block_until_ready(got_f32)
    assert jnp.allclose(ref, got_f32, atol=1e-4, rtol=1e-4)

    # bf16-operand path (f32 accumulation) — looser tolerance
    got_bf16 = core_extractor_scores(
        x2d, params.w1, params.b1, params.w2, params.b2, params.w3, params.b3,
        compute_dtype=jnp.bfloat16)
    jax.block_until_ready(got_bf16)
    assert jnp.allclose(ref, got_bf16, atol=5e-2, rtol=5e-2)

    print("KERNEL_OK")
</pallas_src>

<mosaic_0001>
module attributes {stable_mosaic.version = 11 : i64} {
  func.func @_core_extractor_kernel(%arg0: i32, %arg1: memref<128x32xf32, #tpu.memory_space<vmem>>, %arg2: memref<32x32xf32, #tpu.memory_space<vmem>>, %arg3: memref<1x32xf32, #tpu.memory_space<vmem>>, %arg4: memref<32x32xf32, #tpu.memory_space<vmem>>, %arg5: memref<1x32xf32, #tpu.memory_space<vmem>>, %arg6: memref<1x32xf32, #tpu.memory_space<vmem>>, %arg7: memref<1x1xf32, #tpu.memory_space<vmem>>, %arg8: memref<1x128xf32, #tpu.memory_space<vmem>>) attributes {dimension_semantics = [#tpu.dimension_semantics<parallel>], iteration_bounds = array<i64: 1>, scalar_prefetch = 0 : i64, scratch_operands = 0 : i64, tpu.core_type = #tpu.core_type<tc>, window_params = [{transform_indices = @transform_0, window_bounds = array<i64: 128, 32>}, {pipeline_mode = #tpu.pipeline_mode<synchronous>, transform_indices = @transform_1, window_bounds = array<i64: 32, 32>}, {pipeline_mode = #tpu.pipeline_mode<synchronous>, transform_indices = @transform_2, window_bounds = array<i64: 1, 32>}, {pipeline_mode = #tpu.pipeline_mode<synchronous>, transform_indices = @transform_3, window_bounds = array<i64: 32, 32>}, {pipeline_mode = #tpu.pipeline_mode<synchronous>, transform_indices = @transform_4, window_bounds = array<i64: 1, 32>}, {pipeline_mode = #tpu.pipeline_mode<synchronous>, transform_indices = @transform_5, window_bounds = array<i64: 1, 32>}, {pipeline_mode = #tpu.pipeline_mode<synchronous>, transform_indices = @transform_6, window_bounds = array<i64: 1, 1>}, {transform_indices = @transform_7, window_bounds = array<i64: 1, 128>}]} {
    %c0 = arith.constant 0 : index
    %c0_0 = arith.constant 0 : index
    %0 = vector.load %arg1[%c0, %c0_0] : memref<128x32xf32, #tpu.memory_space<vmem>>, vector<128x32xf32>
    %c0_1 = arith.constant 0 : index
    %c0_2 = arith.constant 0 : index
    %1 = vector.load %arg2[%c0_1, %c0_2] : memref<32x32xf32, #tpu.memory_space<vmem>>, vector<32x32xf32>
    %cst = arith.constant dense<0.000000e+00> : vector<128x32xf32>
    %2 = tpu.matmul %0, %1, %cst {dimension_numbers = #tpu.dot_dimension_numbers<[1], [0], [0], [1], [0, 0, 1, 1], [], []>} : vector<128x32xf32>, vector<32x32xf32>, vector<128x32xf32> -> vector<128x32xf32>
    %c0_3 = arith.constant 0 : index
    %c0_4 = arith.constant 0 : index
    %3 = vector.load %arg3[%c0_3, %c0_4] : memref<1x32xf32, #tpu.memory_space<vmem>>, vector<1x32xf32>
    %4 = vector.broadcast %3 : vector<1x32xf32> to vector<128x32xf32>
    %5 = arith.addf %2, %4 : vector<128x32xf32>
    %cst_5 = arith.constant 0.000000e+00 : f32
    %6 = vector.broadcast %cst_5 : f32 to vector<128x32xf32>
    %7 = arith.maximumf %5, %6 : vector<128x32xf32>
    %c0_6 = arith.constant 0 : index
    %c0_7 = arith.constant 0 : index
    %8 = vector.load %arg4[%c0_6, %c0_7] : memref<32x32xf32, #tpu.memory_space<vmem>>, vector<32x32xf32>
    %cst_8 = arith.constant dense<0.000000e+00> : vector<128x32xf32>
    %9 = tpu.matmul %7, %8, %cst_8 {dimension_numbers = #tpu.dot_dimension_numbers<[1], [0], [0], [1], [0, 0, 1, 1], [], []>} : vector<128x32xf32>, vector<32x32xf32>, vector<128x32xf32> -> vector<128x32xf32>
    %c0_9 = arith.constant 0 : index
    %c0_10 = arith.constant 0 : index
    %10 = vector.load %arg5[%c0_9, %c0_10] : memref<1x32xf32, #tpu.memory_space<vmem>>, vector<1x32xf32>
    %11 = vector.broadcast %10 : vector<1x32xf32> to vector<128x32xf32>
    %12 = arith.addf %9, %11 : vector<128x32xf32>
    %cst_11 = arith.constant 0.000000e+00 : f32
    %13 = vector.broadcast %cst_11 : f32 to vector<128x32xf32>
    %14 = arith.maximumf %12, %13 : vector<128x32xf32>
    %c0_12 = arith.constant 0 : index
    %c0_13 = arith.constant 0 : index
    %15 = vector.load %arg6[%c0_12, %c0_13] : memref<1x32xf32, #tpu.memory_space<vmem>>, vector<1x32xf32>
    %16 = tpu.transpose %14, [1, 0] : vector<128x32xf32> -> vector<32x128xf32>
    %cst_14 = arith.constant dense<0.000000e+00> : vector<1x128xf32>
    %17 = tpu.matmul %15, %16, %cst_14 {dimension_numbers = #tpu.dot_dimension_numbers<[1], [0], [0], [1], [0, 0, 1, 1], [], []>} : vector<1x32xf32>, vector<32x128xf32>, vector<1x128xf32> -> vector<1x128xf32>
    %c0_15 = arith.constant 0 : index
    %c0_16 = arith.constant 0 : index
    %18 = vector.load %arg7[%c0_15, %c0_16] : memref<1x1xf32, #tpu.memory_space<vmem>>, vector<1x1xf32>
    %19 = vector.broadcast %18 : vector<1x1xf32> to vector<1x128xf32>
    %20 = arith.addf %17, %19 : vector<1x128xf32>
    %c0_17 = arith.constant 0 : index
    %c0_18 = arith.constant 0 : index
    %21 = vector.load %arg8[%c0_17, %c0_18] : memref<1x128xf32, #tpu.memory_space<vmem>>, vector<1x128xf32>
    tpu.vector_store %arg8[%c0_17, %c0_18], %20 {strides = array<i32>} : memref<1x128xf32, #tpu.memory_space<vmem>>, vector<1x128xf32>,
    return
  }
  func.func @transform_0(%arg0: i32) -> (i32, i32) {
    %c0_i32 = arith.constant 0 : i32
    %c0_i32_0 = arith.constant 0 : i32
    return %arg0, %c0_i32 : i32, i32
  }
  func.func @transform_1(%arg0: i32) -> (i32, i32) {
    %c0_i32 = arith.constant 0 : i32
    %c0_i32_0 = arith.constant 0 : i32
    %c0_i32_1 = arith.constant 0 : i32
    return %c0_i32, %c0_i32_0 : i32, i32
  }
  func.func @transform_2(%arg0: i32) -> (i32, i32) {
    %c0_i32 = arith.constant 0 : i32
    %c0_i32_0 = arith.constant 0 : i32
    %c0_i32_1 = arith.constant 0 : i32
    return %c0_i32, %c0_i32_0 : i32, i32
  }
  func.func @transform_3(%arg0: i32) -> (i32, i32) {
    %c0_i32 = arith.constant 0 : i32
    %c0_i32_0 = arith.constant 0 : i32
    %c0_i32_1 = arith.constant 0 : i32
    return %c0_i32, %c0_i32_0 : i32, i32
  }
  func.func @transform_4(%arg0: i32) -> (i32, i32) {
    %c0_i32 = arith.constant 0 : i32
    %c0_i32_0 = arith.constant 0 : i32
    %c0_i32_1 = arith.constant 0 : i32
    return %c0_i32, %c0_i32_0 : i32, i32
  }
  func.func @transform_5(%arg0: i32) -> (i32, i32) {
    %c0_i32 = arith.constant 0 : i32
    %c0_i32_0 = arith.constant 0 : i32
    %c0_i32_1 = arith.constant 0 : i32
    return %c0_i32, %c0_i32_0 : i32, i32
  }
  func.func @transform_6(%arg0: i32) -> (i32, i32) {
    %c0_i32 = arith.constant 0 : i32
    %c0_i32_0 = arith.constant 0 : i32
    %c0_i32_1 = arith.constant 0 : i32
    return %c0_i32, %c0_i32_0 : i32, i32
  }
  func.func @transform_7(%arg0: i32) -> (i32, i32) {
    %c0_i32 = arith.constant 0 : i32
    %c0_i32_0 = arith.constant 0 : i32
    return %c0_i32, %arg0 : i32, i32
  }
}

</mosaic_0001>

<bundles_post_ra>
// kernel: core_extractor_forward_nn.1
= control target key start
LH: loop header
LB: loop body
LE: loop exit
PB: predicated region body
PF: predicated region fallthrough
CT: control target
= control target key end

     0   :  { %vm55_vm0 = vcmask 261120   ;;  %vm883_vm1 = vmmov 0   ;;  %s1076_s1 = inlined_call_operand.vmem [shape: f32[32,32], index: 1, kind: input, shape index: {}]   ;;  %s1077_s0 = inlined_call_operand.vmem [shape: f32[128,32], index: 0, kind: input, shape index: {}]   ;;  %s1078_s3 = inlined_call_operand.vmem [shape: f32[32,32], index: 3, kind: input, shape index: {}]   ;;  %s1079_s2 = inlined_call_operand.vmem [shape: f32[1,32], index: 2, kind: input, shape index: {}]   ;;  %s1080_s6 = inlined_call_operand.<no memory space> [shape: f32[1,1], index: 6, kind: input, shape index: {}]   ;;  %s1081_s4 = inlined_call_operand.vmem [shape: f32[1,32], index: 4, kind: input, shape index: {}]   ;;  %s1082_s5 = inlined_call_operand.vmem [shape: f32[1,32], index: 5, kind: input, shape index: {}]   ;;  %s1083_s7 = inlined_call_operand.vmem [shape: f32[1,128], index: 7, kind: output, shape index: {}]  }
   0x1   :  { %v44_v0 = vld [vmem:[%s1076_s1] sm:$0xff]  ;;  %v45_v1 = vld [vmem:[%s1076_s1 + $0x8] sm:$0xff]  ;;  %v46_v2 = vld [vmem:[%s1076_s1 + $0x10] sm:$0xff] }
   0x2   :  { %v829_v3 = vpack.c.bf16 %v45_v1, %v44_v0  ;;  %v47_v4 = vld [vmem:[%s1076_s1 + $0x18] sm:$0xff]  ;;  %v28_v5 = vld [vmem:[%s1077_s0] sm:$0xff]  ;;  %v266_v8 = vld [vmem:[%s1078_s3 + $0x8] sm:$0xff] }
   0x3   :  { %v833_v6 = vpack.c.bf16 %v47_v4, %v46_v2  ;;  %738 = vmatprep.mubr.msk.f32.mxu1 %vm55_vm0, %v28_v5  ;;  %v265_v7 = vld [vmem:[%s1078_s3] sm:$0xff]  ;;  %v267_v9 = vld [vmem:[%s1078_s3 + $0x10] sm:$0xff]  ;;  %v268_v10 = vld [vmem:[%s1078_s3 + $0x18] sm:$0xff] }
   0x4   :  { %830 = vmatprep.subr.bf16.mxu1 %v829_v3  ;;  %v29_v11 = vld [vmem:[%s1077_s0 + $0x8] sm:$0xff]  ;;  %v837_v12 = vpack.c.bf16 %v266_v8, %v265_v7  ;;  %v30_v13 = vld [vmem:[%s1077_s0 + $0x10] sm:$0xff]  ;;  %v841_v14 = vpack.c.bf16 %v268_v10, %v267_v9  ;;  %v31_v15 = vld [vmem:[%s1077_s0 + $0x18] sm:$0xff] }
   0x5   :  { %832 = vmatpush3.bf16.msra.mxu1 %v829_v3  ;;  %v32_v16 = vld [vmem:[%s1077_s0 + $0x20] sm:$0xff]  ;;  %v33_v17 = vld [vmem:[%s1077_s0 + $0x28] sm:$0xff]  ;;  %v34_v18 = vld [vmem:[%s1077_s0 + $0x30] sm:$0xff] }
   0x6   :  { %834 = vmatprep.subr.bf16.mxu1 %v833_v6  ;;  %v35_v19 = vld [vmem:[%s1077_s0 + $0x38] sm:$0xff]  ;;  %v36_v20 = vld [vmem:[%s1077_s0 + $0x40] sm:$0xff]  ;;  %v37_v21 = vld [vmem:[%s1077_s0 + $0x48] sm:$0xff] }
   0x7   :  { %v38_v22 = vld [vmem:[%s1077_s0 + $0x50] sm:$0xff]  ;;  %v39_v23 = vld [vmem:[%s1077_s0 + $0x58] sm:$0xff]  ;;  %v40_v24 = vld [vmem:[%s1077_s0 + $0x60] sm:$0xff] }
   0x8   :  { %v41_v25 = vld [vmem:[%s1077_s0 + $0x68] sm:$0xff]  ;;  %v42_v26 = vld [vmem:[%s1077_s0 + $0x70] sm:$0xff]  ;;  %v43_v27 = vld [vmem:[%s1077_s0 + $0x78] sm:$0xff] }
   0x9   :  { %836 = vmatpush3.bf16.msra.mxu1 %v833_v6  ;;  %v622_v28 = vld [vmem:[%s1079_s2] ss:$0 sm:$0xff]  ;;  %vm1042_vm2 = vmpackc.low %vm55_vm0, %vm55_vm0 }
   0xa   :  { %838 = vmatprep.subr.bf16.mxu1 %v837_v12 }
   0xc   :  { %739 = vmatmul.mubr.msk.f32.vlgmr.msra.gmra.mrb[0].mxu1 %vm55_vm0, %v29_v11 }
   0xd   :  { %741 = vmatprep.mubr.msk.f32.mxu1 %vm55_vm0, %v30_v13  ;;  %840 = vmatpush3.bf16.msra.mxu1 %v837_v12  ;;  %v882_v13 = vmov 0.0|0.0  }
   0xe   :  { %842 = vmatprep.subr.bf16.mxu1 %v841_v14  ;;  %845 = vmatprep.subr.bf16.mxu0 %v882_v13 }
  0x10   :  { %742 = vmatmul.mubr.msk.f32.gmra.mrb[2].mxu1 %vm55_vm0, %v31_v15  ;;  %v885_v15 = vmov 0  }
  0x11   :  { %744 = vmatprep.mubr.msk.f32.mxu1 %vm55_vm0, %v32_v16  ;;  %844 = vmatpush3.bf16.msra.mxu1 %v841_v14  ;;  %v884_v14 = vmov 0.0   ;;  %v12_v16 = vstv %s1080_s6 }
  0x12   :  { %826 = vmatprep.mubr.msk.f32.mxu0 %vm883_vm1, %v884_v14  ;;  %881 = vset.pattern.permute.xlu0 %v885_v15  ;;  %13 = vst [vmem:[#allocation2] sm:$0x1] %v12_v16  ;;  %v492_v14 = vlaneseq }
  0x14   :  { %745 = vmatmul.mubr.msk.f32.gmra.mrb[4].mxu1 %vm55_vm0, %v33_v17  ;;  %v493_v15 = vshrl.u32 %v492_v14, 7 }
  0x15   :  { %747 = vmatprep.mubr.msk.f32.mxu1 %vm55_vm0, %v34_v18  ;;  %v639_v18 = vld [vmem:[%s1081_s4] ss:$0 sm:$0xff] }
  0x16   :  { %v494_v16 = vsub.s32 0, %v493_v15 }
  0x18   :  { %748 = vmatmul.mubr.msk.f32.gmra.mrb[6].mxu1 %vm55_vm0, %v35_v19 }
  0x19   :  { %750 = vmatprep.mubr.msk.f32.mxu1 %vm55_vm0, %v36_v20  ;;  %v486_v17 = vld [vmem:[#allocation2] sm:$0x1] }
  0x1a   :  { %489 = vperm.xlu0 %881, %v486_v17  }
  0x1c   :  { %751 = vmatmul.mubr.msk.f32.gmra.mrb[8].mxu1 %vm55_vm0, %v37_v21 }
  0x1d   :  { %753 = vmatprep.mubr.msk.f32.mxu1 %vm55_vm0, %v38_v22 }
  0x20   :  { %754 = vmatmul.mubr.msk.f32.gmra.mrb[10].mxu1 %vm55_vm0, %v39_v23 }
  0x21   :  { %756 = vmatprep.mubr.msk.f32.mxu1 %vm55_vm0, %v40_v24 }
  0x24   :  { %757 = vmatmul.mubr.msk.f32.gmra.mrb[12].mxu1 %vm55_vm0, %v41_v25 }
  0x25   :  { %759 = vmatprep.mubr.msk.f32.mxu1 %vm55_vm0, %v42_v26 }
  0x28   :  { %760 = vmatmul.mubr.msk.f32.gmra.mrb[14].mxu1 %vm55_vm0, %v43_v27 }
  0x99   :  { %v490_v17 = vpop.permute.xlu0 %489 }
  0xdf   :  { %v740_v29 = vpop.f32.mrb[0].mxu1 }
  0xe0   :  { %v176_v30 = vadd.f32 %v740_v29, %v622_v28  ;;  %v170_v31 = vpop.f32.mrb[1].mxu1 }
  0xe1   :  { %v171_v32 = vadd.f32 %v622_v28, %v170_v31 }
  0xe2   :  { %v250_v35 = vmax.f32 %v176_v30, 0.0 }
  0xe3   :  { %v249_v33 = vmax.f32 %v171_v32, 0.0  ;;  %v743_v34 = vpop.f32.mrb[2].mxu1 }
  0xe4   :  { %v186_v36 = vadd.f32 %v743_v34, %v622_v28  ;;  %v180_v37 = vpop.f32.mrb[3].mxu1 }
  0xe5   :  { %v181_v38 = vadd.f32 %v622_v28, %v180_v37  ;;  %770 = vmatprep.mubr.msk.f32.mxu1 %vm55_vm0, %v249_v33 }
  0xe6   :  { %v252_v39 = vmax.f32 %v186_v36, 0.0  ;;  %771 = vmatmul.mubr.msk.f32.vlgmr.msra.gmra.mrb[16].mxu1 %vm55_vm0, %v250_v35 }
  0xe7   :  { %v251_v40 = vmax.f32 %v181_v38, 0.0  ;;  %v746_v41 = vpop.f32.mrb[4].mxu1 }
  0xe8   :  { %v196_v42 = vadd.f32 %v746_v41, %v622_v28  ;;  %v190_v43 = vpop.f32.mrb[5].mxu1 }
  0xe9   :  { %773 = vmatprep.mubr.msk.f32.mxu1 %vm55_vm0, %v251_v40  ;;  %v191_v44 = vadd.f32 %v622_v28, %v190_v43 }
  0xea   :  { %774 = vmatmul.mubr.msk.f32.gmra.mrb[18].mxu1 %vm55_vm0, %v252_v39  ;;  %v254_v45 = vmax.f32 %v196_v42, 0.0 }
  0xeb   :  { %v253_v46 = vmax.f32 %v191_v44, 0.0  ;;  %v749_v47 = vpop.f32.mrb[6].mxu1 }
  0xec   :  { %v206_v48 = vadd.f32 %v749_v47, %v622_v28  ;;  %v200_v49 = vpop.f32.mrb[7].mxu1 }
  0xed   :  { %776 = vmatprep.mubr.msk.f32.mxu1 %vm55_vm0, %v253_v46  ;;  %v201_v50 = vadd.f32 %v622_v28, %v200_v49 }
  0xee   :  { %777 = vmatmul.mubr.msk.f32.gmra.mrb[20].mxu1 %vm55_vm0, %v254_v45  ;;  %v256_v51 = vmax.f32 %v206_v48, 0.0 }
  0xef   :  { %v255_v52 = vmax.f32 %v201_v50, 0.0  ;;  %v752_v53 = vpop.f32.mrb[8].mxu1 }
  0xf0   :  { %v216_v54 = vadd.f32 %v752_v53, %v622_v28  ;;  %v210_v55 = vpop.f32.mrb[9].mxu1 }
  0xf1   :  { %779 = vmatprep.mubr.msk.f32.mxu1 %vm55_vm0, %v255_v52  ;;  %v211_v56 = vadd.f32 %v622_v28, %v210_v55 }
  0xf2   :  { %780 = vmatmul.mubr.msk.f32.gmra.mrb[22].mxu1 %vm55_vm0, %v256_v51  ;;  %v258_v57 = vmax.f32 %v216_v54, 0.0 }
  0xf3   :  { %v257_v58 = vmax.f32 %v211_v56, 0.0  ;;  %v755_v59 = vpop.f32.mrb[10].mxu1 }
  0xf4   :  { %v226_v60 = vadd.f32 %v755_v59, %v622_v28  ;;  %v220_v61 = vpop.f32.mrb[11].mxu1 }
  0xf5   :  { %782 = vmatprep.mubr.msk.f32.mxu1 %vm55_vm0, %v257_v58  ;;  %v221_v62 = vadd.f32 %v622_v28, %v220_v61 }
  0xf6   :  { %783 = vmatmul.mubr.msk.f32.gmra.mrb[24].mxu1 %vm55_vm0, %v258_v57  ;;  %v260_v63 = vmax.f32 %v226_v60, 0.0 }
  0xf7   :  { %v259_v0 = vmax.f32 %v221_v62, 0.0  ;;  %v758_v1 = vpop.f32.mrb[12].mxu1 }
  0xf8   :  { %v236_v2 = vadd.f32 %v758_v1, %v622_v28  ;;  %v230_v3 = vpop.f32.mrb[13].mxu1 }
  0xf9   :  { %785 = vmatprep.mubr.msk.f32.mxu1 %vm55_vm0, %v259_v0  ;;  %v231_v4 = vadd.f32 %v622_v28, %v230_v3 }
  0xfa   :  { %786 = vmatmul.mubr.msk.f32.gmra.mrb[26].mxu1 %vm55_vm0, %v260_v63  ;;  %v262_v5 = vmax.f32 %v236_v2, 0.0 }
  0xfb   :  { %v261_v6 = vmax.f32 %v231_v4, 0.0  ;;  %v761_v7 = vpop.f32.mrb[14].mxu1 }
  0xfc   :  { %v246_v8 = vadd.f32 %v761_v7, %v622_v28  ;;  %v240_v9 = vpop.f32.mrb[15].mxu1 }
  0xfd   :  { %788 = vmatprep.mubr.msk.f32.mxu1 %vm55_vm0, %v261_v6  ;;  %v241_v10 = vadd.f32 %v622_v28, %v240_v9 }
  0xfe   :  { %789 = vmatmul.mubr.msk.f32.gmra.mrb[28].mxu1 %vm55_vm0, %v262_v5  ;;  %v264_v11 = vmax.f32 %v246_v8, 0.0 }
  0xff   :  { %v263_v12 = vmax.f32 %v241_v10, 0.0 }
 0x101   :  { %791 = vmatprep.mubr.msk.f32.mxu1 %vm55_vm0, %v263_v12  ;;  %v485_v12 = vld [vmem:[%s1082_s5] sm:$0x1] }
 0x102   :  { %792 = vmatmul.mubr.msk.f32.gmra.mrb[30].mxu1 %vm55_vm0, %v264_v11 }
 0x1b9   :  { %v772_v19 = vpop.f32.mrb[16].mxu1 }
 0x1ba   :  { %v396_v20 = vadd.f32 %v772_v19, %v639_v18  ;;  %v390_v21 = vpop.f32.mrb[17].mxu1 }
 0x1bb   :  { %v391_v22 = vadd.f32 %v639_v18, %v390_v21 }
 0x1bc   :  { %v470_v23 = vmax.f32 %v396_v20, 0.0 }
 0x1bd   :  { %v469_v24 = vmax.f32 %v391_v22, 0.0  ;;  %v775_v25 = vpop.f32.mrb[18].mxu1 }
 0x1be   :  { %v406_v26 = vadd.f32 %v775_v25, %v639_v18  ;;  %v400_v27 = vpop.f32.mrb[19].mxu1 }
 0x1bf   :  { %v846_v29 = vpack.c.bf16 %v470_v23, %v469_v24  ;;  %v401_v30 = vadd.f32 %v639_v18, %v400_v27 }
 0x1c0   :  { %v472_v31 = vmax.f32 %v406_v26, 0.0 }
 0x1c1   :  { %v471_v32 = vmax.f32 %v401_v30, 0.0  ;;  %848 = vmatpush3.bf16.xpose.msk.msra.mxu0 %vm1042_vm2, %v846_v29  ;;  %v778_v33 = vpop.f32.mrb[20].mxu1 }
 0x1c2   :  { %v416_v34 = vadd.f32 %v778_v33, %v639_v18  ;;  %v410_v35 = vpop.f32.mrb[21].mxu1  ;;  %849 = vmatprep.subr.bf16.mxu0 %v882_v13 }
 0x1c3   :  { %v850_v36 = vpack.c.bf16 %v472_v31, %v471_v32  ;;  %v411_v37 = vadd.f32 %v639_v18, %v410_v35 }
 0x1c4   :  { %v474_v38 = vmax.f32 %v416_v34, 0.0 }
 0x1c5   :  { %v473_v39 = vmax.f32 %v411_v37, 0.0  ;;  %v781_v40 = vpop.f32.mrb[22].mxu1 }
 0x1c6   :  { %v426_v41 = vadd.f32 %v781_v40, %v639_v18  ;;  %v420_v42 = vpop.f32.mrb[23].mxu1 }
 0x1c7   :  { %v854_v43 = vpack.c.bf16 %v474_v38, %v473_v39  ;;  %v421_v44 = vadd.f32 %v639_v18, %v420_v42 }
 0x1c8   :  { %v476_v45 = vmax.f32 %v426_v41, 0.0 }
 0x1c9   :  { %852 = vmatpush3.bf16.xpose.msk.msra.mxu0 %vm1042_vm2, %v850_v36  ;;  %v475_v46 = vmax.f32 %v421_v44, 0.0  ;;  %v784_v47 = vpop.f32.mrb[24].mxu1 }
 0x1ca   :  { %853 = vmatprep.subr.bf16.mxu0 %v882_v13  ;;  %v436_v48 = vadd.f32 %v784_v47, %v639_v18  ;;  %v430_v49 = vpop.f32.mrb[25].mxu1 }
 0x1cb   :  { %v858_v50 = vpack.c.bf16 %v476_v45, %v475_v46  ;;  %v431_v51 = vadd.f32 %v639_v18, %v430_v49 }
 0x1cc   :  { %v478_v52 = vmax.f32 %v436_v48, 0.0 }
 0x1cd   :  { %v477_v53 = vmax.f32 %v431_v51, 0.0  ;;  %v787_v54 = vpop.f32.mrb[26].mxu1 }
 0x1ce   :  { %v446_v55 = vadd.f32 %v787_v54, %v639_v18  ;;  %v440_v56 = vpop.f32.mrb[27].mxu1 }
 0x1cf   :  { %v862_v57 = vpack.c.bf16 %v478_v52, %v477_v53  ;;  %v441_v58 = vadd.f32 %v639_v18, %v440_v56 }
 0x1d0   :  { %v480_v59 = vmax.f32 %v446_v55, 0.0 }
 0x1d1   :  { %856 = vmatpush3.bf16.xpose.msk.msra.mxu0 %vm1042_vm2, %v854_v43  ;;  %v479_v60 = vmax.f32 %v441_v58, 0.0  ;;  %v790_v61 = vpop.f32.mrb[28].mxu1 }
 0x1d2   :  { %857 = vmatprep.subr.bf16.mxu0 %v882_v13  ;;  %v456_v62 = vadd.f32 %v790_v61, %v639_v18  ;;  %v450_v63 = vpop.f32.mrb[29].mxu1 }
 0x1d3   :  { %v866_v0 = vpack.c.bf16 %v480_v59, %v479_v60  ;;  %v451_v1 = vadd.f32 %v639_v18, %v450_v63 }
 0x1d4   :  { %v482_v2 = vmax.f32 %v456_v62, 0.0 }
 0x1d5   :  { %v481_v3 = vmax.f32 %v451_v1, 0.0  ;;  %v793_v4 = vpop.f32.mrb[30].mxu1 }
 0x1d6   :  { %v466_v5 = vadd.f32 %v793_v4, %v639_v18  ;;  %v460_v6 = vpop.f32.mrb[31].mxu1 }
 0x1d7   :  { %v870_v7 = vpack.c.bf16 %v482_v2, %v481_v3  ;;  %v461_v8 = vadd.f32 %v639_v18, %v460_v6  ;;  %v495_v18 = vrot.slane %v490_v17, %v494_v16 }
 0x1d8   :  { %v484_v9 = vmax.f32 %v466_v5, 0.0 }
 0x1d9   :  { %860 = vmatpush3.bf16.xpose.msk.msra.mxu0 %vm1042_vm2, %v858_v50  ;;  %v483_v10 = vmax.f32 %v461_v8, 0.0 }
 0x1da   :  { %861 = vmatprep.subr.bf16.mxu0 %v882_v13 }
 0x1db   :  { %v874_v11 = vpack.c.bf16 %v484_v9, %v483_v10 }
 0x1e1   :  { %864 = vmatpush3.bf16.xpose.msk.msra.mxu0 %vm1042_vm2, %v862_v57 }
 0x1e2   :  { %865 = vmatprep.subr.bf16.mxu0 %v882_v13 }
 0x1e9   :  { %868 = vmatpush3.bf16.xpose.msk.msra.mxu0 %vm1042_vm2, %v866_v0 }
 0x1ea   :  { %869 = vmatprep.subr.bf16.mxu0 %v882_v13 }
 0x1f1   :  { %872 = vmatpush3.bf16.xpose.msk.msra.mxu0 %vm1042_vm2, %v870_v7 }
 0x1f2   :  { %873 = vmatprep.subr.bf16.mxu0 %v882_v13 }
 0x1f9   :  { %876 = vmatpush3.bf16.xpose.msk.msra.mxu0 %vm1042_vm2, %v874_v11 }
 0x200   :  { %827 = vmatmul.mubr.msk.f32.vlgmr.msra.gmra.mrb[0].mxu0 %vm55_vm0, %v485_v12 }
 0x2d3   :  { %v613_v19 = vpop.f32.mrb[0].mxu0 }
 0x2d4   :  { %v614_v20 = vadd.f32 %v613_v19, %v495_v18  ;;  %v828_v21 = vpop.f32.mrb[1].mxu0 }
 0x2d6   :  { %617 = vst [vmem:[%s1083_s7] sm:$0x1] %v614_v20 }

</bundles_post_ra>
